<compile_context>
chip_gen: v6e
topology: v6e:2x2x1
jax: 0.10.0
libtpu: 0.0.40
codegen_flags: <defaults>
</compile_context>

<pallas_src>
import jax
import jax.numpy as jnp
from jax.experimental import pallas as pl
from jax.experimental.pallas import tpu as pltpu


def mlp_kernel(x_ref, w1_ref, b1_ref, w2_ref, b2_ref, o_ref, acc_ref):
    k = pl.program_id(1)

    @pl.when(k == 0)
    def _init():
        acc_ref[...] = jnp.zeros_like(acc_ref)

    # fc1 partial product on the MXU: x cast to bf16 in-register, f32 accumulation
    # in the VMEM scratch (bias/ReLU stay f32 on the VPU at finalize).
    acc_ref[...] += jnp.dot(
        x_ref[...].astype(jnp.bfloat16),
        w1_ref[...],
        preferred_element_type=jnp.float32,
    )

    @pl.when(k == pl.num_programs(1) - 1)
    def _finalize():
        h = jnp.maximum(acc_ref[...] + b1_ref[...], 0.0)          # bias + ReLU (f32, VPU)

        # Dropout(p=0.3): identity in eval/inference mode (matches nn.Dropout.eval()).
        # TODO(synk): training-mode dropout would draw a mask with pltpu.prng_seed +
        #             pltpu.prng_random_bits and scale by 1/(1-p).

        # fc2 (single output unit): elementwise multiply + lane reduction on VPU/XLU
        # instead of an N=1 MXU matmul (which would waste >99% of the MXU).
        y = jnp.sum(h * w2_ref[...], axis=-1, keepdims=True)       # (TB, 1)
        o_ref[...] = y + b2_ref[0, 0]                              # scalar bias from SMEM


def _round_up(x, m):
    return (x + m - 1) // m * m


def _choose_tk(D, H, resident_limit_bytes):
    """Full D if the bf16 w1 fits resident in VMEM; otherwise the largest
    multiple-of-128 divisor of D whose (TK, H) bf16 slab fits the streaming budget."""
    if D * H * 2 <= resident_limit_bytes or D % 128 != 0:
        return D
    stream_budget = resident_limit_bytes // 3          # per-buffer budget (double-buffered stream)
    divisors = [d for d in range(128, D + 1, 128) if D % d == 0]
    fitting = [d for d in divisors if d * H * 2 <= stream_budget]
    return max(fitting) if fitting else min(divisors)


def mlp_forward(x, w1, b1, w2, b2, *, tb=256, w1_resident_limit_bytes=24 << 20):
    """x: [B, D] (float); w1: [D, H]; b1: [1, H]; w2: [H, 1]; b2: [1, 1] -> [B, 1] f32.

    Weights are stored [in, out] (transposed relative to PyTorch's [out, in]).
    fc1 uses bf16 MXU inputs with f32 accumulation (store w1 in bf16 in real use so
    the cast below is a no-op); bias/ReLU/fc2 are f32.
    """
    B, D = x.shape
    H = w1.shape[1]

    # Weights / biases: small, prepared once.  x is passed untouched (no cast/pad pass).
    w1_bf = w1 if w1.dtype == jnp.bfloat16 else w1.astype(jnp.bfloat16)
    b1_f = b1.reshape(1, H).astype(jnp.float32)
    w2_row = w2.reshape(1, H).astype(jnp.float32)
    b2_s = b2.reshape(1, 1).astype(jnp.float32)

    # Batch tile: full-extent when B is small (always a legal block), else 256
    # (multiple of 8; matches v6e/v7x MXU and amortizes per-grid-step overhead).
    TB = B if B <= tb else tb
    n_blocks = pl.cdiv(B, TB)          # ragged tail handled by partial-block masking

    # K tile: stream w1 over K only when it does not fit resident in VMEM (v7x 64 MiB).
    TK = _choose_tk(D, H, w1_resident_limit_bytes)
    n_k = D // TK
    resident = n_k == 1

    # Explicit VMEM budget: w1 block(s) + resident rows + double-buffered x/out tiles
    # + f32 accumulator scratch, with padding to (8/16, 128) tiles and headroom.
    f32, bf16 = 4, 2
    w1_bufs = 1 if resident else 2
    vmem_need = (
        w1_bufs * _round_up(TK, 16) * _round_up(H, 128) * bf16       # w1
        + 2 * 8 * _round_up(H, 128) * f32                            # b1 + w2 rows
        + 2 * _round_up(TB, 8) * _round_up(TK, 128) * x.dtype.itemsize  # x (double-buffered)
        + 2 * _round_up(TB, 8) * 128 * f32                           # out (lane-padded)
        + _round_up(TB, 8) * _round_up(H, 128) * f32                 # accumulator scratch
    )
    try:
        vmem_cap = pltpu.get_tpu_info().vmem_capacity_bytes
    except Exception:
        vmem_cap = 64 << 20            # assume the smallest generation (v7x) if unknown
    vmem_limit = int(min(max(vmem_need + (4 << 20), 32 << 20), vmem_cap * 7 // 8))

    cost = pl.CostEstimate(
        flops=2 * B * D * H + 4 * B * H,
        transcendentals=0,
        bytes_accessed=B * D * x.dtype.itemsize + D * H * bf16 + 2 * H * f32 + B * f32 + f32,
    )

    def run(single_buffer_resident: bool):
        def resident_spec(shape):
            if single_buffer_resident:
                return pl.BlockSpec(shape, lambda i, k: (0, 0),
                                    pipeline_mode=pl.Buffered(1))
            return pl.BlockSpec(shape, lambda i, k: (0, 0))

        if resident:
            w1_spec = resident_spec((TK, H))                         # VMEM-resident
        else:
            w1_spec = pl.BlockSpec((TK, H), lambda i, k: (k, 0))     # streamed over K

        in_specs = [
            pl.BlockSpec((TB, TK), lambda i, k: (i, k)),             # x: tiled batch/K
            w1_spec,
            resident_spec((1, H)),                                   # b1
            resident_spec((1, H)),                                   # w2 row
            pl.BlockSpec(memory_space=pltpu.MemorySpace.SMEM),       # b2 scalar in SMEM
        ]
        out_spec = pl.BlockSpec((TB, 1), lambda i, k: (i, 0))

        return pl.pallas_call(
            mlp_kernel,
            out_shape=jax.ShapeDtypeStruct((B, 1), jnp.float32),
            grid_spec=pltpu.PrefetchScalarGridSpec(
                num_scalar_prefetch=0,
                grid=(n_blocks, n_k),
                in_specs=in_specs,
                out_specs=out_spec,
                scratch_shapes=[pltpu.VMEM((TB, H), jnp.float32)],
            ),
            compiler_params=pltpu.CompilerParams(
                # Batch axis is independent; K is a reduction (last, "arbitrary").
                # TODO(synk): on v7x verify "parallel" actually splits the batch axis
                #             across the 2 TensorCores; if not, switch to
                #             pltpu.CORE_PARALLEL or an explicit pl.core_map mesh.
                dimension_semantics=("parallel", "arbitrary"),
                vmem_limit_bytes=vmem_limit,
            ),
            cost_estimate=cost,
        )(x, w1_bf, b1_f, w2_row, b2_s)

    try:
        return run(single_buffer_resident=True)
    except Exception:
        # Fallback for jax builds that reject pipeline_mode on pallas_call BlockSpecs:
        # identical kernel; resident operands revert to default double-buffering.
        return run(single_buffer_resident=False)


def init_params(key, input_size, hidden_size):
    """Deterministic init mimicking nn.Linear's U(-1/sqrt(fan_in), 1/sqrt(fan_in))."""
    k1, k2, k3, k4 = jax.random.split(key, 4)
    bound1 = 1.0 / jnp.sqrt(input_size)
    bound2 = 1.0 / jnp.sqrt(hidden_size)
    # stored as [in, out] (transposed relative to PyTorch's [out, in])
    w1 = jax.random.uniform(k1, (input_size, hidden_size), jnp.float32, -bound1, bound1)
    b1 = jax.random.uniform(k2, (1, hidden_size), jnp.float32, -bound1, bound1)
    w2 = jax.random.uniform(k3, (hidden_size, 1), jnp.float32, -bound2, bound2)
    b2 = jax.random.uniform(k4, (1, 1), jnp.float32, -bound2, bound2)
    return w1, b1, w2, b2


def _reference(x, w1, b1, w2, b2):
    """Pure-JAX reference with the same bf16-matmul / f32-accumulate numerics."""
    h = jnp.dot(x.astype(jnp.bfloat16), w1.astype(jnp.bfloat16),
                preferred_element_type=jnp.float32)
    h = jnp.maximum(h + b1.reshape(1, -1), 0.0)
    return jnp.sum(h * w2.reshape(1, -1), axis=-1, keepdims=True) + b2.reshape(1, 1)


if __name__ == "__main__":
    key = jax.random.PRNGKey(0)

    # Case 1: toy shapes consistent with the module (single grid step, resident w1).
    kx, kp = jax.random.split(key)
    B, D, H = 8, 32, 32
    x = jax.random.normal(kx, (B, D), dtype=jnp.float32)
    w1, b1, w2, b2 = init_params(kp, D, H)
    out = jax.block_until_ready(mlp_forward(x, w1, b1, w2, b2))
    ref = _reference(x, w1, b1, w2, b2)
    assert out.shape == (B, 1)
    assert jnp.allclose(out, ref, atol=1e-4, rtol=1e-4), "case1 mismatch"
    # semantic sanity vs pure-f32 PyTorch math (loose tolerance for bf16 matmul inputs)
    ref_f32 = jnp.maximum(x @ w1 + b1, 0.0) @ w2 + b2
    assert jnp.allclose(out, ref_f32, atol=3e-2, rtol=3e-2), "case1 f32 mismatch"

    # Case 2: batch grid with a ragged tail and NO wrapper-side padding; resident w1.
    kx2, kp2 = jax.random.split(jax.random.PRNGKey(1))
    B2, D2, H2 = 300, 256, 128          # TB=256 -> grid=(2, 1); rows 300..511 are masked
    x2 = jax.random.normal(kx2, (B2, D2), dtype=jnp.float32)
    p2 = init_params(kp2, D2, H2)
    out2 = jax.block_until_ready(mlp_forward(x2, *p2))
    ref2 = _reference(x2, *p2)
    assert out2.shape == (B2, 1)
    assert jnp.allclose(out2, ref2, atol=1e-3, rtol=1e-3), "case2 mismatch"

    # Case 3: force K-streaming of w1 (accumulator init/finalize path) via a tiny limit.
    kx3, kp3 = jax.random.split(jax.random.PRNGKey(2))
    B3, D3, H3 = 64, 512, 128           # forced limit -> TK=128, grid=(1, 4)
    x3 = jax.random.normal(kx3, (B3, D3), dtype=jnp.float32)
    p3 = init_params(kp3, D3, H3)
    out3 = jax.block_until_ready(mlp_forward(x3, *p3, w1_resident_limit_bytes=1 << 16))
    ref3 = _reference(x3, *p3)
    assert out3.shape == (B3, 1)
    assert jnp.allclose(out3, ref3, atol=1e-3, rtol=1e-3), "case3 mismatch"

    print("KERNEL_OK")
</pallas_src>

<mosaic_0001>
module attributes {stable_mosaic.version = 11 : i64} {
  func.func @mlp_kernel(%arg0: i32, %arg1: i32, %arg2: memref<8x32xf32, #tpu.memory_space<vmem>>, %arg3: memref<32x32xbf16, #tpu.memory_space<vmem>>, %arg4: memref<1x32xf32, #tpu.memory_space<vmem>>, %arg5: memref<1x32xf32, #tpu.memory_space<vmem>>, %arg6: memref<1x1xf32, #tpu.memory_space<smem>>, %arg7: memref<8x1xf32, #tpu.memory_space<vmem>>, %arg8: memref<8x32xf32, #tpu.memory_space<vmem>>) attributes {dimension_semantics = [#tpu.dimension_semantics<parallel>, #tpu.dimension_semantics<arbitrary>], iteration_bounds = array<i64: 1, 1>, scalar_prefetch = 0 : i64, scratch_operands = 1 : i64, tpu.core_type = #tpu.core_type<tc>, window_params = [{transform_indices = @transform_0, window_bounds = array<i64: 8, 32>}, {pipeline_mode = #tpu.pipeline_mode<synchronous>, transform_indices = @transform_1, window_bounds = array<i64: 32, 32>}, {pipeline_mode = #tpu.pipeline_mode<synchronous>, transform_indices = @transform_2, window_bounds = array<i64: 1, 32>}, {pipeline_mode = #tpu.pipeline_mode<synchronous>, transform_indices = @transform_3, window_bounds = array<i64: 1, 32>}, {transform_indices = @transform_4, window_bounds = array<i64: 1, 1>}, {transform_indices = @transform_5, window_bounds = array<i64: 8, 1>}]} {
    %c0_i32 = arith.constant 0 : i32
    %0 = arith.cmpi eq, %arg1, %c0_i32 : i32
    %1 = arith.extui %0 : i1 to i32
    %c0_i32_0 = arith.constant 0 : i32
    %2 = arith.cmpi ne, %1, %c0_i32_0 : i32
    scf.if %2 {
      %cst_10 = arith.constant 0.000000e+00 : f32
      %13 = vector.broadcast %cst_10 : f32 to vector<8x32xf32>
      %c0_11 = arith.constant 0 : index
      %c0_12 = arith.constant 0 : index
      %14 = vector.load %arg8[%c0_11, %c0_12] : memref<8x32xf32, #tpu.memory_space<vmem>>, vector<8x32xf32>
      tpu.vector_store %arg8[%c0_11, %c0_12], %13 {strides = array<i32>} : memref<8x32xf32, #tpu.memory_space<vmem>>, vector<8x32xf32>,
    } else {
    }
    %c0 = arith.constant 0 : index
    %c0_1 = arith.constant 0 : index
    %3 = vector.load %arg8[%c0, %c0_1] : memref<8x32xf32, #tpu.memory_space<vmem>>, vector<8x32xf32>
    %c0_2 = arith.constant 0 : index
    %c0_3 = arith.constant 0 : index
    %4 = vector.load %arg2[%c0_2, %c0_3] : memref<8x32xf32, #tpu.memory_space<vmem>>, vector<8x32xf32>
    %5 = arith.truncf %4 : vector<8x32xf32> to vector<8x32xbf16>
    %c0_4 = arith.constant 0 : index
    %c0_5 = arith.constant 0 : index
    %6 = vector.load %arg3[%c0_4, %c0_5] : memref<32x32xbf16, #tpu.memory_space<vmem>>, vector<32x32xbf16>
    %cst = arith.constant dense<0.000000e+00> : vector<8x32xf32>
    %7 = tpu.matmul %5, %6, %cst {dimension_numbers = #tpu.dot_dimension_numbers<[1], [0], [0], [1], [0, 0, 1, 1], [], []>} : vector<8x32xbf16>, vector<32x32xbf16>, vector<8x32xf32> -> vector<8x32xf32>
    %8 = arith.addf %3, %7 : vector<8x32xf32>
    %c0_6 = arith.constant 0 : index
    %c0_7 = arith.constant 0 : index
    %9 = vector.load %arg8[%c0_6, %c0_7] : memref<8x32xf32, #tpu.memory_space<vmem>>, vector<8x32xf32>
    tpu.vector_store %arg8[%c0_6, %c0_7], %8 {strides = array<i32>} : memref<8x32xf32, #tpu.memory_space<vmem>>, vector<8x32xf32>,
    %c0_i32_8 = arith.constant 0 : i32
    %10 = arith.cmpi eq, %arg1, %c0_i32_8 : i32
    %11 = arith.extui %10 : i1 to i32
    %c0_i32_9 = arith.constant 0 : i32
    %12 = arith.cmpi ne, %11, %c0_i32_9 : i32
    scf.if %12 {
      %c0_10 = arith.constant 0 : index
      %c0_11 = arith.constant 0 : index
      %13 = vector.load %arg8[%c0_10, %c0_11] : memref<8x32xf32, #tpu.memory_space<vmem>>, vector<8x32xf32>
      %c0_12 = arith.constant 0 : index
      %c0_13 = arith.constant 0 : index
      %14 = vector.load %arg4[%c0_12, %c0_13] : memref<1x32xf32, #tpu.memory_space<vmem>>, vector<1x32xf32>
      %15 = vector.broadcast %14 : vector<1x32xf32> to vector<8x32xf32>
      %16 = arith.addf %13, %15 : vector<8x32xf32>
      %cst_14 = arith.constant 0.000000e+00 : f32
      %17 = vector.broadcast %cst_14 : f32 to vector<8x32xf32>
      %18 = arith.maximumf %16, %17 : vector<8x32xf32>
      %c0_15 = arith.constant 0 : index
      %c0_16 = arith.constant 0 : index
      %19 = vector.load %arg5[%c0_15, %c0_16] : memref<1x32xf32, #tpu.memory_space<vmem>>, vector<1x32xf32>
      %20 = vector.broadcast %19 : vector<1x32xf32> to vector<8x32xf32>
      %21 = arith.mulf %18, %20 : vector<8x32xf32>
      %cst_17 = arith.constant dense<0.000000e+00> : vector<8xf32>
      %22 = vector.multi_reduction <add>, %21, %cst_17 [1] : vector<8x32xf32> to vector<8xf32>
      %23 = vector.shape_cast %22 : vector<8xf32> to vector<8x1xf32>
      %c0_18 = arith.constant 0 : index
      %c0_19 = arith.constant 0 : index
      %24 = memref.load %arg6[%c0_18, %c0_19] : memref<1x1xf32, #tpu.memory_space<smem>>
      %25 = vector.broadcast %24 : f32 to vector<8x1xf32>
      %26 = arith.addf %23, %25 : vector<8x1xf32>
      %c0_20 = arith.constant 0 : index
      %c0_21 = arith.constant 0 : index
      %27 = vector.load %arg7[%c0_20, %c0_21] : memref<8x1xf32, #tpu.memory_space<vmem>>, vector<8x1xf32>
      tpu.vector_store %arg7[%c0_20, %c0_21], %26 {strides = array<i32>} : memref<8x1xf32, #tpu.memory_space<vmem>>, vector<8x1xf32>,
    } else {
    }
    return
  }
  func.func @transform_0(%arg0: i32, %arg1: i32) -> (i32, i32) {
    %c0_i32 = arith.constant 0 : i32
    return %arg0, %arg1 : i32, i32
  }
  func.func @transform_1(%arg0: i32, %arg1: i32) -> (i32, i32) {
    %c0_i32 = arith.constant 0 : i32
    %c0_i32_0 = arith.constant 0 : i32
    %c0_i32_1 = arith.constant 0 : i32
    return %c0_i32, %c0_i32_0 : i32, i32
  }
  func.func @transform_2(%arg0: i32, %arg1: i32) -> (i32, i32) {
    %c0_i32 = arith.constant 0 : i32
    %c0_i32_0 = arith.constant 0 : i32
    %c0_i32_1 = arith.constant 0 : i32
    return %c0_i32, %c0_i32_0 : i32, i32
  }
  func.func @transform_3(%arg0: i32, %arg1: i32) -> (i32, i32) {
    %c0_i32 = arith.constant 0 : i32
    %c0_i32_0 = arith.constant 0 : i32
    %c0_i32_1 = arith.constant 0 : i32
    return %c0_i32, %c0_i32_0 : i32, i32
  }
  func.func @transform_4(%arg0: i32, %arg1: i32) -> (i32, i32) {
    %c0_i32 = arith.constant 0 : i32
    %c0_i32_0 = arith.constant 0 : i32
    %c0_i32_1 = arith.constant 0 : i32
    return %c0_i32, %c0_i32_0 : i32, i32
  }
  func.func @transform_5(%arg0: i32, %arg1: i32) -> (i32, i32) {
    %c0_i32 = arith.constant 0 : i32
    %c0_i32_0 = arith.constant 0 : i32
    return %arg0, %c0_i32 : i32, i32
  }
}

module attributes {stable_mosaic.version = 11 : i64} {
  func.func @mlp_kernel(%arg0: i32, %arg1: i32, %arg2: memref<8x32xf32, #tpu.memory_space<vmem>>, %arg3: memref<32x32xbf16, #tpu.memory_space<vmem>>, %arg4: memref<1x32xf32, #tpu.memory_space<vmem>>, %arg5: memref<1x32xf32, #tpu.memory_space<vmem>>, %arg6: memref<1x1xf32, #tpu.memory_space<smem>>, %arg7: memref<8x1xf32, #tpu.memory_space<vmem>>, %arg8: memref<8x32xf32, #tpu.memory_space<vmem>>) attributes {dimension_semantics = [#tpu.dimension_semantics<parallel>, #tpu.dimension_semantics<arbitrary>], iteration_bounds = array<i64: 1, 1>, scalar_prefetch = 0 : i64, scratch_operands = 1 : i64, tpu.core_type = #tpu.core_type<tc>, window_params = [{transform_indices = @transform_0, window_bounds = array<i64: 8, 32>}, {pipeline_mode = #tpu.pipeline_mode<synchronous>, transform_indices = @transform_1, window_bounds = array<i64: 32, 32>}, {pipeline_mode = #tpu.pipeline_mode<synchronous>, transform_indices = @transform_2, window_bounds = array<i64: 1, 32>}, {pipeline_mode = #tpu.pipeline_mode<synchronous>, transform_indices = @transform_3, window_bounds = array<i64: 1, 32>}, {transform_indices = @transform_4, window_bounds = array<i64: 1, 1>}, {transform_indices = @transform_5, window_bounds = array<i64: 8, 1>}]} {
    %c0_i32 = arith.constant 0 : i32
    %0 = arith.cmpi eq, %arg1, %c0_i32 : i32
    %1 = arith.extui %0 : i1 to i32
    %c0_i32_0 = arith.constant 0 : i32
    %2 = arith.cmpi ne, %1, %c0_i32_0 : i32
    scf.if %2 {
      %cst_10 = arith.constant 0.000000e+00 : f32
      %13 = vector.broadcast %cst_10 : f32 to vector<8x32xf32>
      %c0_11 = arith.constant 0 : index
      %c0_12 = arith.constant 0 : index
      %14 = vector.load %arg8[%c0_11, %c0_12] : memref<8x32xf32, #tpu.memory_space<vmem>>, vector<8x32xf32>
      tpu.vector_store %arg8[%c0_11, %c0_12], %13 {strides = array<i32>} : memref<8x32xf32, #tpu.memory_space<vmem>>, vector<8x32xf32>,
    } else {
    }
    %c0 = arith.constant 0 : index
    %c0_1 = arith.constant 0 : index
    %3 = vector.load %arg8[%c0, %c0_1] : memref<8x32xf32, #tpu.memory_space<vmem>>, vector<8x32xf32>
    %c0_2 = arith.constant 0 : index
    %c0_3 = arith.constant 0 : index
    %4 = vector.load %arg2[%c0_2, %c0_3] : memref<8x32xf32, #tpu.memory_space<vmem>>, vector<8x32xf32>
    %5 = arith.truncf %4 : vector<8x32xf32> to vector<8x32xbf16>
    %c0_4 = arith.constant 0 : index
    %c0_5 = arith.constant 0 : index
    %6 = vector.load %arg3[%c0_4, %c0_5] : memref<32x32xbf16, #tpu.memory_space<vmem>>, vector<32x32xbf16>
    %cst = arith.constant dense<0.000000e+00> : vector<8x32xf32>
    %7 = tpu.matmul %5, %6, %cst {dimension_numbers = #tpu.dot_dimension_numbers<[1], [0], [0], [1], [0, 0, 1, 1], [], []>} : vector<8x32xbf16>, vector<32x32xbf16>, vector<8x32xf32> -> vector<8x32xf32>
    %8 = arith.addf %3, %7 : vector<8x32xf32>
    %c0_6 = arith.constant 0 : index
    %c0_7 = arith.constant 0 : index
    %9 = vector.load %arg8[%c0_6, %c0_7] : memref<8x32xf32, #tpu.memory_space<vmem>>, vector<8x32xf32>
    tpu.vector_store %arg8[%c0_6, %c0_7], %8 {strides = array<i32>} : memref<8x32xf32, #tpu.memory_space<vmem>>, vector<8x32xf32>,
    %c0_i32_8 = arith.constant 0 : i32
    %10 = arith.cmpi eq, %arg1, %c0_i32_8 : i32
    %11 = arith.extui %10 : i1 to i32
    %c0_i32_9 = arith.constant 0 : i32
    %12 = arith.cmpi ne, %11, %c0_i32_9 : i32
    scf.if %12 {
      %c0_10 = arith.constant 0 : index
      %c0_11 = arith.constant 0 : index
      %13 = vector.load %arg8[%c0_10, %c0_11] : memref<8x32xf32, #tpu.memory_space<vmem>>, vector<8x32xf32>
      %c0_12 = arith.constant 0 : index
      %c0_13 = arith.constant 0 : index
      %14 = vector.load %arg4[%c0_12, %c0_13] : memref<1x32xf32, #tpu.memory_space<vmem>>, vector<1x32xf32>
      %15 = vector.broadcast %14 : vector<1x32xf32> to vector<8x32xf32>
      %16 = arith.addf %13, %15 : vector<8x32xf32>
      %cst_14 = arith.constant 0.000000e+00 : f32
      %17 = vector.broadcast %cst_14 : f32 to vector<8x32xf32>
      %18 = arith.maximumf %16, %17 : vector<8x32xf32>
      %c0_15 = arith.constant 0 : index
      %c0_16 = arith.constant 0 : index
      %19 = vector.load %arg5[%c0_15, %c0_16] : memref<1x32xf32, #tpu.memory_space<vmem>>, vector<1x32xf32>
      %20 = vector.broadcast %19 : vector<1x32xf32> to vector<8x32xf32>
      %21 = arith.mulf %18, %20 : vector<8x32xf32>
      %cst_17 = arith.constant dense<0.000000e+00> : vector<8xf32>
      %22 = vector.multi_reduction <add>, %21, %cst_17 [1] : vector<8x32xf32> to vector<8xf32>
      %23 = vector.shape_cast %22 : vector<8xf32> to vector<8x1xf32>
      %c0_18 = arith.constant 0 : index
      %c0_19 = arith.constant 0 : index
      %24 = memref.load %arg6[%c0_18, %c0_19] : memref<1x1xf32, #tpu.memory_space<smem>>
      %25 = vector.broadcast %24 : f32 to vector<8x1xf32>
      %26 = arith.addf %23, %25 : vector<8x1xf32>
      %c0_20 = arith.constant 0 : index
      %c0_21 = arith.constant 0 : index
      %27 = vector.load %arg7[%c0_20, %c0_21] : memref<8x1xf32, #tpu.memory_space<vmem>>, vector<8x1xf32>
      tpu.vector_store %arg7[%c0_20, %c0_21], %26 {strides = array<i32>} : memref<8x1xf32, #tpu.memory_space<vmem>>, vector<8x1xf32>,
    } else {
    }
    return
  }
  func.func @transform_0(%arg0: i32, %arg1: i32) -> (i32, i32) {
    %c0_i32 = arith.constant 0 : i32
    return %arg0, %arg1 : i32, i32
  }
  func.func @transform_1(%arg0: i32, %arg1: i32) -> (i32, i32) {
    %c0_i32 = arith.constant 0 : i32
    %c0_i32_0 = arith.constant 0 : i32
    %c0_i32_1 = arith.constant 0 : i32
    return %c0_i32, %c0_i32_0 : i32, i32
  }
  func.func @transform_2(%arg0: i32, %arg1: i32) -> (i32, i32) {
    %c0_i32 = arith.constant 0 : i32
    %c0_i32_0 = arith.constant 0 : i32
    %c0_i32_1 = arith.constant 0 : i32
    return %c0_i32, %c0_i32_0 : i32, i32
  }
  func.func @transform_3(%arg0: i32, %arg1: i32) -> (i32, i32) {
    %c0_i32 = arith.constant 0 : i32
    %c0_i32_0 = arith.constant 0 : i32
    %c0_i32_1 = arith.constant 0 : i32
    return %c0_i32, %c0_i32_0 : i32, i32
  }
  func.func @transform_4(%arg0: i32, %arg1: i32) -> (i32, i32) {
    %c0_i32 = arith.constant 0 : i32
    %c0_i32_0 = arith.constant 0 : i32
    %c0_i32_1 = arith.constant 0 : i32
    return %c0_i32, %c0_i32_0 : i32, i32
  }
  func.func @transform_5(%arg0: i32, %arg1: i32) -> (i32, i32) {
    %c0_i32 = arith.constant 0 : i32
    %c0_i32_0 = arith.constant 0 : i32
    return %arg0, %c0_i32 : i32, i32
  }
}

</mosaic_0001>

<bundles_post_ra>
// kernel: tpu_custom_call.1
= control target key start
LH: loop header
LB: loop body
LE: loop exit
PB: predicated region body
PF: predicated region fallthrough
CT: control target
= control target key end

     0   :  { %11 = vsyncpa [#allocation5], 0  ;;  %s280_s0 = inlined_call_operand.hbm [shape: f32[8,32], index: 0, kind: input, shape index: {}]   ;;  %s281_s1 = inlined_call_operand.hbm [shape: bf16[32,32], index: 1, kind: input, shape index: {}]   ;;  %s282_s2 = inlined_call_operand.vmem [shape: f32[1,32], index: 2, kind: input, shape index: {}]   ;;  %s283_s3 = inlined_call_operand.vmem [shape: f32[1,32], index: 3, kind: input, shape index: {}]   ;;  %s284_s4 = inlined_call_operand.<no memory space> [shape: f32[1,1], index: 4, kind: input, shape index: {}]   ;;  %s285_s5 = inlined_call_operand.vmem [shape: f32[8,1], index: 5, kind: output, shape index: {}]  }
   0x1   :  { %12 = vsyncpa [#allocation7], 0  ;;  %s222_s18 = smov [#allocation4]   ;;  %s223_s20 = smov [#allocation6]  }
   0x2   :  { %s19_s19 = sshll.u32 %s222_s18, 4  ;;  %s28_s21 = sshll.u32 %s223_s20, 4  ;;  %s20_s19 = int_to_ptr.vmem [resolvable:$true] %s19_s19  ;;  %s29_s21 = int_to_ptr.vmem [resolvable:$true] %s28_s21 }
   0x3   :  { %s186_s22 = scalar_lea.vmem %s20_s19, 128  ;;  %p191_p1 = scmp.lt.s32.totalorder %s20_s19, %s20_s19 }
   0x4   :  { %p187_p0 = scmp.ne.s32.totalorder %s20_s19, %s186_s22  ;;  %p192_p2 = scmp.lt.s32.totalorder %s186_s22, %s186_s22 }
   0x6   :  { %p193_p3 = por %p192_p2, %p191_p1 }
   0x8   :  { %p194_p4 = pnand %p193_p3, %p187_p0 }
   0xa   :  { %197 = shalt.err (!%p194_p4)
}
   0xb   :  { %22 = dma.hbm_to_vmem [thread:$0]  %s280_s0, 128, %s20_s19, [#allocation5]  }
   0xc   :  { %s206_s25 = scalar_lea.vmem %s29_s21, 256  ;;  %p211_p6 = scmp.lt.s32.totalorder %s29_s21, %s29_s21 }
   0xd   :  { %p207_p5 = scmp.ne.s32.totalorder %s29_s21, %s206_s25  ;;  %p212_p7 = scmp.lt.s32.totalorder %s206_s25, %s206_s25 }
   0xf   :  { %p213_p8 = por %p212_p7, %p211_p6 }
  0x11   :  { %p214_p9 = pnand %p213_p8, %p207_p5 }
  0x13   :  { %217 = shalt.err (!%p214_p9)
}
  0x14   :  { %s224_s26 = smov 64   ;;  %s225_s27 = smov 4  }
  0x15   :  { %34 = dma.hbm_to_vmem [thread:$0]  %s281_s1, 256, %s29_s21, [#allocation7], %s224_s26, %s224_s26, %s225_s27  }
  0x16   :  { %218 = dma.done.wait [#allocation5], 128  }
  0x17   :  { %219 = vsyncadd [#allocation5], 4294967168 }
  0x18   :  { %220 = dma.done.wait [#allocation7], 256  }
  0x19   :  { %221 = vsyncadd [#allocation7], 4294967040  ;;  %vm52_vm0 = vcmask 261120   ;;  %v226_v0 = vmov 0.0   ;;  %vm227_vm1 = vmmov 0   ;;  %v176_v1 = vld [vmem:[#allocation6 + $0x8] sm:$0xff]   ;;  %v144_v18 = vstv %s284_s4 }
  0x1a   :  { %162 = vmatprep.subr.bf16.mxu0 %v226_v0  ;;  %166 = vmatprep.mubr.msk.bf16.mxu0 %vm227_vm1, %v226_v0  ;;  %53 = vst.msk [vmem:[#allocation2] sm:$0xff] %vm52_vm0, %v226_v0  ;;  %v177_v2 = vld [vmem:[#allocation6] sm:$0xff]   ;;  %v55_v3 = vld [vmem:[#allocation4] sm:$0xff]  ;;  %v157_v11 = vld [vmem:[%s282_s2] ss:$0 sm:$0xff]  ;;  %vm146_vm2 = vcmask 7168  }
  0x1b   :  { %163 = vmatpush3.bf16.msra.mxu0 %v176_v1  ;;  %v56_v4 = vpack.c.bf16 %v55_v3, %v55_v3  ;;  %v158_v14 = vld [vmem:[%s283_s3] ss:$0 sm:$0xff] }
  0x1c   :  { %164 = vmatprep.subr.bf16.mxu0 %v226_v0 }
  0x1f   :  { %165 = vmatpush3.bf16.msra.mxu0 %v177_v2 }
  0x21   :  { %v54_v5 = vld [vmem:[#allocation2] sm:$0xff] }
  0x22   :  { %167 = vmatmul.mubr.msk.bf16.vlgmr.msra.gmra.mxu0 %vm52_vm0, %v56_v4 }
  0xe2   :  { %v111_v6 = vpop.f32.mrf.mxu0 }
  0xe3   :  { %v117_v7 = vadd.f32 %v111_v6, %v54_v5 }
  0xe4   :  { %v168_v8 = vpop.f32.mrf.mxu0 }
  0xe5   :  { %118 = vst.msk [vmem:[#allocation2] sm:$0xff] %vm52_vm0, %v117_v7 }
  0xe6   :  { %v114_v9 = vpop.f32.mrf.mxu0 }
  0xe8   :  { %v169_v10 = vpop.f32.mrf.mxu0 }
  0xec   :  { %v122_v12 = vld [vmem:[#allocation2] sm:$0xff] }
  0xed   :  { %v130_v13 = vadd.f32 %v157_v11, %v122_v12 }
  0xef   :  { %v131_v15 = vmax.f32 %v130_v13, 0.0 }
  0xf1   :  { %v139_v16 = vmul.f32 %v158_v14, %v131_v15 }
  0xf3   :  { %v140_v17 = vsel %vm52_vm0, %v139_v16, 0.0 }
  0xf4   :  { %141 = vadd.xlane.f32.xlu0 %v140_v17 }
 0x17d   :  { %v142_v19 = vpop.xlane.xlu0 %141 }
 0x17e   :  { %v145_v20 = vadd.f32 %v144_v18, %v142_v19 }
 0x180   :  { %147 = vst.msk [vmem:[%s285_s5] sm:$0xff] %vm146_vm2, %v145_v20 }
 0x181   :  { %152 = vsyncpa [#allocation5], 1 }
 0x182   :  { %153 = vsyncpa [#allocation7], 1 }

// kernel: tpu_custom_call.1
= control target key start
LH: loop header
LB: loop body
LE: loop exit
PB: predicated region body
PF: predicated region fallthrough
CT: control target
= control target key end

     0   :  { %11 = vsyncpa [#allocation5], 0  ;;  %s280_s0 = inlined_call_operand.hbm [shape: f32[8,32], index: 0, kind: input, shape index: {}]   ;;  %s281_s1 = inlined_call_operand.hbm [shape: bf16[32,32], index: 1, kind: input, shape index: {}]   ;;  %s282_s2 = inlined_call_operand.vmem [shape: f32[1,32], index: 2, kind: input, shape index: {}]   ;;  %s283_s3 = inlined_call_operand.vmem [shape: f32[1,32], index: 3, kind: input, shape index: {}]   ;;  %s284_s4 = inlined_call_operand.<no memory space> [shape: f32[1,1], index: 4, kind: input, shape index: {}]   ;;  %s285_s5 = inlined_call_operand.vmem [shape: f32[8,1], index: 5, kind: output, shape index: {}]  }
   0x1   :  { %12 = vsyncpa [#allocation7], 0  ;;  %s222_s18 = smov [#allocation4]   ;;  %s223_s20 = smov [#allocation6]  }
   0x2   :  { %s19_s19 = sshll.u32 %s222_s18, 4  ;;  %s28_s21 = sshll.u32 %s223_s20, 4  ;;  %s20_s19 = int_to_ptr.vmem [resolvable:$true] %s19_s19  ;;  %s29_s21 = int_to_ptr.vmem [resolvable:$true] %s28_s21 }
   0x3   :  { %s186_s22 = scalar_lea.vmem %s20_s19, 128  ;;  %p191_p1 = scmp.lt.s32.totalorder %s20_s19, %s20_s19 }
   0x4   :  { %p187_p0 = scmp.ne.s32.totalorder %s20_s19, %s186_s22  ;;  %p192_p2 = scmp.lt.s32.totalorder %s186_s22, %s186_s22 }
   0x6   :  { %p193_p3 = por %p192_p2, %p191_p1 }
   0x8   :  { %p194_p4 = pnand %p193_p3, %p187_p0 }
   0xa   :  { %197 = shalt.err (!%p194_p4)
}
   0xb   :  { %22 = dma.hbm_to_vmem [thread:$0]  %s280_s0, 128, %s20_s19, [#allocation5]  }
   0xc   :  { %s206_s25 = scalar_lea.vmem %s29_s21, 256  ;;  %p211_p6 = scmp.lt.s32.totalorder %s29_s21, %s29_s21 }
   0xd   :  { %p207_p5 = scmp.ne.s32.totalorder %s29_s21, %s206_s25  ;;  %p212_p7 = scmp.lt.s32.totalorder %s206_s25, %s206_s25 }
   0xf   :  { %p213_p8 = por %p212_p7, %p211_p6 }
  0x11   :  { %p214_p9 = pnand %p213_p8, %p207_p5 }
  0x13   :  { %217 = shalt.err (!%p214_p9)
}
  0x14   :  { %s224_s26 = smov 64   ;;  %s225_s27 = smov 4  }
  0x15   :  { %34 = dma.hbm_to_vmem [thread:$0]  %s281_s1, 256, %s29_s21, [#allocation7], %s224_s26, %s224_s26, %s225_s27  }
  0x16   :  { %218 = dma.done.wait [#allocation5], 128  }
  0x17   :  { %219 = vsyncadd [#allocation5], 4294967168 }
  0x18   :  { %220 = dma.done.wait [#allocation7], 256  }
  0x19   :  { %221 = vsyncadd [#allocation7], 4294967040  ;;  %vm52_vm0 = vcmask 261120   ;;  %v226_v0 = vmov 0.0   ;;  %vm227_vm1 = vmmov 0   ;;  %v176_v1 = vld [vmem:[#allocation6 + $0x8] sm:$0xff]   ;;  %v144_v18 = vstv %s284_s4 }
  0x1a   :  { %162 = vmatprep.subr.bf16.mxu0 %v226_v0  ;;  %166 = vmatprep.mubr.msk.bf16.mxu0 %vm227_vm1, %v226_v0  ;;  %53 = vst.msk [vmem:[#allocation2] sm:$0xff] %vm52_vm0, %v226_v0  ;;  %v177_v2 = vld [vmem:[#allocation6] sm:$0xff]   ;;  %v55_v3 = vld [vmem:[#allocation4] sm:$0xff]  ;;  %v157_v11 = vld [vmem:[%s282_s2] ss:$0 sm:$0xff]  ;;  %vm146_vm2 = vcmask 7168  }
  0x1b   :  { %163 = vmatpush3.bf16.msra.mxu0 %v176_v1  ;;  %v56_v4 = vpack.c.bf16 %v55_v3, %v55_v3  ;;  %v158_v14 = vld [vmem:[%s283_s3] ss:$0 sm:$0xff] }
  0x1c   :  { %164 = vmatprep.subr.bf16.mxu0 %v226_v0 }
  0x1f   :  { %165 = vmatpush3.bf16.msra.mxu0 %v177_v2 }
  0x21   :  { %v54_v5 = vld [vmem:[#allocation2] sm:$0xff] }
  0x22   :  { %167 = vmatmul.mubr.msk.bf16.vlgmr.msra.gmra.mxu0 %vm52_vm0, %v56_v4 }
  0xe2   :  { %v111_v6 = vpop.f32.mrf.mxu0 }
  0xe3   :  { %v117_v7 = vadd.f32 %v111_v6, %v54_v5 }
  0xe4   :  { %v168_v8 = vpop.f32.mrf.mxu0 }
  0xe5   :  { %118 = vst.msk [vmem:[#allocation2] sm:$0xff] %vm52_vm0, %v117_v7 }
  0xe6   :  { %v114_v9 = vpop.f32.mrf.mxu0 }
  0xe8   :  { %v169_v10 = vpop.f32.mrf.mxu0 }
  0xec   :  { %v122_v12 = vld [vmem:[#allocation2] sm:$0xff] }
  0xed   :  { %v130_v13 = vadd.f32 %v157_v11, %v122_v12 }
  0xef   :  { %v131_v15 = vmax.f32 %v130_v13, 0.0 }
  0xf1   :  { %v139_v16 = vmul.f32 %v158_v14, %v131_v15 }
  0xf3   :  { %v140_v17 = vsel %vm52_vm0, %v139_v16, 0.0 }
  0xf4   :  { %141 = vadd.xlane.f32.xlu0 %v140_v17 }
 0x17d   :  { %v142_v19 = vpop.xlane.xlu0 %141 }
 0x17e   :  { %v145_v20 = vadd.f32 %v144_v18, %v142_v19 }
 0x180   :  { %147 = vst.msk [vmem:[%s285_s5] sm:$0xff] %vm146_vm2, %v145_v20 }
 0x181   :  { %152 = vsyncpa [#allocation5], 1 }
 0x182   :  { %153 = vsyncpa [#allocation7], 1 }

</bundles_post_ra>
